<compile_context>
chip_gen: v6e
topology: v6e:2x2x1
jax: 0.10.0
libtpu: 0.0.40
codegen_flags: <defaults>
</compile_context>

<pallas_src>
import jax
import jax.numpy as jnp
from jax.experimental import pallas as pl
from jax.experimental.pallas import tpu as pltpu


# ----------------------------------------------------------------------------
# Packed-parameter slab layout (f32, [P_ROWS, P_COLS] = [48, 12]):
#   rows 0..11, col 0 : w0   (Linear(1,12) weights, as a feature column)
#   rows 0..11, col 1 : b0
#   rows 0..11, col 2 : b1
#   rows 0..9 , col 3 : b2   (rows 10,11 zero)
#   row 12, cols 0..9 : wmu  (as a row; cols 10,11 zero)
#   rows 16..27       : W1^T (12x12)                 -- starts on sublane mult.
#   rows 32..43       : W2^T (10x12, rows 10,11 zero)-- starts on sublane mult.
# Scalars (bmu, sigma) travel separately in SMEM.
# ----------------------------------------------------------------------------
P_ROWS, P_COLS = 48, 12
COL_W0, COL_B0, COL_B1, COL_B2 = 0, 1, 2, 3
ROW_WMU = 12
ROW_W1 = 16
ROW_W2 = 32


def _round_up(n, m):
    return ((n + m - 1) // m) * m


def net_forward_kernel(x_ref, p_ref, s_ref, out_ref):
    x = x_ref[...]                            # [1, BT]   batch on lanes
    p = p_ref[...]                            # [48, 12]  parameter slab

    w0c = p[0:12, COL_W0:COL_W0 + 1]          # [12, 1]
    b0c = p[0:12, COL_B0:COL_B0 + 1]          # [12, 1]
    b1c = p[0:12, COL_B1:COL_B1 + 1]          # [12, 1]
    b2c = p[0:12, COL_B2:COL_B2 + 1]          # [12, 1] (rows 10,11 zero)
    w1t = p[ROW_W1:ROW_W1 + 12, :]            # [12, 12] = w1.T
    w2t = p[ROW_W2:ROW_W2 + 12, :]            # [12, 12] = w2.T (rows 10,11 zero)
    wmu = p[ROW_WMU:ROW_WMU + 1, :]           # [1, 12]  (lanes 10,11 zero)
    bmu = s_ref[0]                            # SMEM scalars
    sigma = s_ref[1]

    # layer 0: K=1 contraction -> pure VPU broadcast multiply (no MXU pass)
    h = jnp.tanh(w0c * x + b0c)                                       # [12, BT]

    # hidden layers: W^T [12,12] @ H [12,BT]; batch fills MXU result lanes
    h = jnp.tanh(jnp.dot(w1t, h, preferred_element_type=jnp.float32) + b1c)
    h = jnp.tanh(jnp.dot(w2t, h, preferred_element_type=jnp.float32) + b2c)

    # mu head: [1,12] @ [12,BT] (lane-dense result)
    mu = jnp.dot(wmu, h, preferred_element_type=jnp.float32) + bmu    # [1, BT]

    out_ref[0:1, :] = mu
    out_ref[1:2, :] = jnp.full_like(mu, sigma)   # sigma fused into the output


def pack_params(params, sigma=0.1):
    """Pack (w0,b0,w1,b1,w2,b2,wmu,bmu) into a [48,12] slab + (2,) SMEM scalars."""
    w0, b0, w1, b1, w2, b2, wmu, bmu = params
    slab = jnp.zeros((P_ROWS, P_COLS), jnp.float32)   # zero init => pad rows/lanes 0
    slab = slab.at[0:12, COL_W0].set(w0.reshape(12))
    slab = slab.at[0:12, COL_B0].set(b0.reshape(12))
    slab = slab.at[0:12, COL_B1].set(b1.reshape(12))
    slab = slab.at[0:10, COL_B2].set(b2.reshape(10))
    slab = slab.at[ROW_WMU, 0:10].set(wmu.reshape(10))
    slab = slab.at[ROW_W1:ROW_W1 + 12, 0:12].set(w1.T)
    slab = slab.at[ROW_W2:ROW_W2 + 10, 0:12].set(w2.T)
    scal = jnp.stack([bmu.reshape(()).astype(jnp.float32),
                      jnp.float32(sigma)])
    return slab, scal


def net_forward(x, params_slab, scal, block_b=65536):
    """Matches Net.forward: returns [B, 2] = concat([mu, sigma], axis=1)."""
    B = x.shape[0]
    xr = x.reshape(1, B).astype(jnp.float32)           # batch on lanes

    # Lane tile: multiple of 128; aim for >= 2 grid steps (v7x megacore) while
    # capping per-step payload so VMEM stays well under the 32 MiB scoped
    # default on all of v5e/v6e/v7x (input 256 KiB, output 512 KiB,
    # [12,BT] intermediates ~4 MiB each at the 65536 cap).
    bt = min(block_b, _round_up(pl.cdiv(B, 2), 128))
    b_pad = _round_up(B, bt)
    if b_pad != B:
        xr = jnp.pad(xr, ((0, 0), (0, b_pad - B)))     # padded cdiv grid
    grid = (b_pad // bt,)

    out = pl.pallas_call(
        net_forward_kernel,
        out_shape=jax.ShapeDtypeStruct((2, b_pad), jnp.float32),
        grid=grid,
        in_specs=[
            pl.BlockSpec((1, bt), lambda i: (0, i)),            # lane-dense x
            pl.BlockSpec((P_ROWS, P_COLS), lambda i: (0, 0)),   # resident slab
            pl.BlockSpec(memory_space=pltpu.MemorySpace.SMEM),  # bmu, sigma
        ],
        out_specs=pl.BlockSpec((2, bt), lambda i: (0, i)),      # lane-dense out
        compiler_params=pltpu.CompilerParams(
            dimension_semantics=("parallel",)),
    )(xr, params_slab, scal)

    # [2, B_pad] -> [B, 2] (drop padding, transpose back to the module layout)
    return out[:, :B].T


def init_params(key, n_feature=1, n_hidden=(12, 12, 10), n_output=1):
    """Deterministic PyTorch-style init: U(-1/sqrt(fan_in), 1/sqrt(fan_in))."""
    dims = [n_feature] + list(n_hidden) + [n_output]
    params = []
    for fan_in, fan_out in zip(dims[:-1], dims[1:]):
        key, kw, kb = jax.random.split(key, 3)
        bound = 1.0 / jnp.sqrt(float(fan_in))
        w = jax.random.uniform(kw, (fan_in, fan_out), jnp.float32,
                               minval=-bound, maxval=bound)
        b = jax.random.uniform(kb, (1, fan_out), jnp.float32,
                               minval=-bound, maxval=bound)
        params += [w, b]
    return tuple(params)


def reference_forward(x, params, sigma=0.1):
    w0, b0, w1, b1, w2, b2, wmu, bmu = params
    h = jnp.tanh(x @ w0 + b0)
    h = jnp.tanh(h @ w1 + b1)
    h = jnp.tanh(h @ w2 + b2)
    mu = h @ wmu + bmu
    sig = jnp.full_like(mu, sigma)
    return jnp.concatenate([mu, sig], axis=1)


if __name__ == "__main__":
    key = jax.random.PRNGKey(0)
    kp, kx1, kx2 = jax.random.split(key, 3)
    params = init_params(kp)
    slab, scal = pack_params(params, sigma=0.1)

    # Small batch (single-tile grid); non-saturating tanh regime so the middle
    # layers are actually exercised numerically.
    B1 = 100
    x1 = jax.random.uniform(kx1, (B1, 1), jnp.float32, minval=-3.0, maxval=3.0)
    out1 = jax.block_until_ready(net_forward(x1, slab, scal))
    ref1 = reference_forward(x1, params)
    assert out1.shape == (B1, 2)
    assert jnp.allclose(out1, ref1, atol=2e-5, rtol=1e-4)

    # Batch that is not a multiple of the tile: padded cdiv grid with 2
    # parallel steps (exercises the multi-tile path / megacore split).
    B2 = 1000
    x2 = jax.random.uniform(kx2, (B2, 1), jnp.float32, minval=-3.0, maxval=3.0)
    out2 = jax.block_until_ready(net_forward(x2, slab, scal))
    ref2 = reference_forward(x2, params)
    assert out2.shape == (B2, 2)
    assert jnp.allclose(out2, ref2, atol=2e-5, rtol=1e-4)

    print("KERNEL_OK")
</pallas_src>

<mosaic_0001>
module attributes {stable_mosaic.version = 11 : i64} {
  func.func @net_forward_kernel(%arg0: i32, %arg1: memref<1x128xf32, #tpu.memory_space<vmem>>, %arg2: memref<48x12xf32, #tpu.memory_space<vmem>>, %arg3: memref<2xf32, #tpu.memory_space<smem>>, %arg4: memref<2x128xf32, #tpu.memory_space<vmem>>) attributes {dimension_semantics = [#tpu.dimension_semantics<parallel>], iteration_bounds = array<i64: 1>, scalar_prefetch = 0 : i64, scratch_operands = 0 : i64, tpu.core_type = #tpu.core_type<tc>, window_params = [{transform_indices = @transform_0, window_bounds = array<i64: 1, 128>}, {pipeline_mode = #tpu.pipeline_mode<synchronous>, transform_indices = @transform_1, window_bounds = array<i64: 48, 12>}, {transform_indices = @transform_2, window_bounds = array<i64: 2>}, {transform_indices = @transform_3, window_bounds = array<i64: 2, 128>}]} {
    %c0 = arith.constant 0 : index
    %c0_0 = arith.constant 0 : index
    %0 = vector.load %arg1[%c0, %c0_0] : memref<1x128xf32, #tpu.memory_space<vmem>>, vector<1x128xf32>
    %c0_1 = arith.constant 0 : index
    %c0_2 = arith.constant 0 : index
    %1 = vector.load %arg2[%c0_1, %c0_2] : memref<48x12xf32, #tpu.memory_space<vmem>>, vector<48x12xf32>
    %2 = vector.extract_strided_slice %1 {offsets = [0, 0], sizes = [12, 1], strides = [1, 1]} : vector<48x12xf32> to vector<12x1xf32>
    %3 = vector.extract_strided_slice %1 {offsets = [0, 1], sizes = [12, 1], strides = [1, 1]} : vector<48x12xf32> to vector<12x1xf32>
    %4 = vector.extract_strided_slice %1 {offsets = [0, 2], sizes = [12, 1], strides = [1, 1]} : vector<48x12xf32> to vector<12x1xf32>
    %5 = vector.extract_strided_slice %1 {offsets = [0, 3], sizes = [12, 1], strides = [1, 1]} : vector<48x12xf32> to vector<12x1xf32>
    %6 = vector.extract_strided_slice %1 {offsets = [16, 0], sizes = [12, 12], strides = [1, 1]} : vector<48x12xf32> to vector<12x12xf32>
    %7 = vector.extract_strided_slice %1 {offsets = [32, 0], sizes = [12, 12], strides = [1, 1]} : vector<48x12xf32> to vector<12x12xf32>
    %8 = vector.extract_strided_slice %1 {offsets = [12, 0], sizes = [1, 12], strides = [1, 1]} : vector<48x12xf32> to vector<1x12xf32>
    %c0_3 = arith.constant 0 : index
    %9 = memref.load %arg3[%c0_3] : memref<2xf32, #tpu.memory_space<smem>>
    %c1 = arith.constant 1 : index
    %10 = memref.load %arg3[%c1] : memref<2xf32, #tpu.memory_space<smem>>
    %11 = vector.broadcast %2 : vector<12x1xf32> to vector<12x128xf32>
    %12 = vector.broadcast %0 : vector<1x128xf32> to vector<12x128xf32>
    %13 = arith.mulf %11, %12 : vector<12x128xf32>
    %14 = vector.broadcast %3 : vector<12x1xf32> to vector<12x128xf32>
    %15 = arith.addf %13, %14 : vector<12x128xf32>
    %16 = math.tanh %15 : vector<12x128xf32>
    %cst = arith.constant dense<0.000000e+00> : vector<12x128xf32>
    %17 = tpu.matmul %6, %16, %cst {dimension_numbers = #tpu.dot_dimension_numbers<[1], [0], [0], [1], [0, 0, 1, 1], [], []>} : vector<12x12xf32>, vector<12x128xf32>, vector<12x128xf32> -> vector<12x128xf32>
    %18 = vector.broadcast %4 : vector<12x1xf32> to vector<12x128xf32>
    %19 = arith.addf %17, %18 : vector<12x128xf32>
    %20 = math.tanh %19 : vector<12x128xf32>
    %cst_4 = arith.constant dense<0.000000e+00> : vector<12x128xf32>
    %21 = tpu.matmul %7, %20, %cst_4 {dimension_numbers = #tpu.dot_dimension_numbers<[1], [0], [0], [1], [0, 0, 1, 1], [], []>} : vector<12x12xf32>, vector<12x128xf32>, vector<12x128xf32> -> vector<12x128xf32>
    %22 = vector.broadcast %5 : vector<12x1xf32> to vector<12x128xf32>
    %23 = arith.addf %21, %22 : vector<12x128xf32>
    %24 = math.tanh %23 : vector<12x128xf32>
    %cst_5 = arith.constant dense<0.000000e+00> : vector<1x128xf32>
    %25 = tpu.matmul %8, %24, %cst_5 {dimension_numbers = #tpu.dot_dimension_numbers<[1], [0], [0], [1], [0, 0, 1, 1], [], []>} : vector<1x12xf32>, vector<12x128xf32>, vector<1x128xf32> -> vector<1x128xf32>
    %26 = vector.broadcast %9 : f32 to vector<1x128xf32>
    %27 = arith.addf %25, %26 : vector<1x128xf32>
    %c0_6 = arith.constant 0 : index
    %c0_7 = arith.constant 0 : index
    %28 = vector.load %arg4[%c0_6, %c0_7] : memref<2x128xf32, #tpu.memory_space<vmem>>, vector<1x128xf32>
    tpu.vector_store %arg4[%c0_6, %c0_7], %27 {strides = array<i32>} : memref<2x128xf32, #tpu.memory_space<vmem>>, vector<1x128xf32>,
    %29 = vector.broadcast %10 : f32 to vector<1x128xf32>
    %c1_8 = arith.constant 1 : index
    %c0_9 = arith.constant 0 : index
    %30 = vector.load %arg4[%c1_8, %c0_9] : memref<2x128xf32, #tpu.memory_space<vmem>>, vector<1x128xf32>
    tpu.vector_store %arg4[%c1_8, %c0_9], %29 {strides = array<i32>} : memref<2x128xf32, #tpu.memory_space<vmem>>, vector<1x128xf32>,
    return
  }
  func.func @transform_0(%arg0: i32) -> (i32, i32) {
    %c0_i32 = arith.constant 0 : i32
    %c0_i32_0 = arith.constant 0 : i32
    return %c0_i32, %arg0 : i32, i32
  }
  func.func @transform_1(%arg0: i32) -> (i32, i32) {
    %c0_i32 = arith.constant 0 : i32
    %c0_i32_0 = arith.constant 0 : i32
    %c0_i32_1 = arith.constant 0 : i32
    return %c0_i32, %c0_i32_0 : i32, i32
  }
  func.func @transform_2(%arg0: i32) -> i32 {
    %c0_i32 = arith.constant 0 : i32
    %c0_i32_0 = arith.constant 0 : i32
    return %c0_i32 : i32
  }
  func.func @transform_3(%arg0: i32) -> (i32, i32) {
    %c0_i32 = arith.constant 0 : i32
    %c0_i32_0 = arith.constant 0 : i32
    return %c0_i32, %arg0 : i32, i32
  }
}

</mosaic_0001>

<bundles_post_ra>
// kernel: tpu_custom_call.1
= control target key start
LH: loop header
LB: loop body
LE: loop exit
PB: predicated region body
PF: predicated region fallthrough
CT: control target
= control target key end

     0   :  { %8 = vsyncpa [#allocation4], 0  ;;  %s528_s0 = inlined_call_operand.vmem [shape: f32[1,128], index: 0, kind: input, shape index: {}]   ;;  %s529_s1 = inlined_call_operand.vmem [shape: f32[48,12], index: 1, kind: input, shape index: {}]   ;;  %s530_s2 = inlined_call_operand.vmem [shape: f32[2], index: 2, kind: input, shape index: {}]   ;;  %s531_s3 = inlined_call_operand.hbm [shape: f32[2,128], index: 3, kind: output, shape index: {}]  }
   0x1   :  { %9 = vsyncpa [#allocation3], 0  ;;  %s20_s14 = sshll.u32 %s530_s2, 4  ;;  %s21_s14 = int_to_ptr.vmem [resolvable:$true] %s20_s14 }
   0x2   :  { %s420_s15 = scalar_lea.vmem %s21_s14, 16  ;;  %p425_p1 = scmp.lt.s32.totalorder %s21_s14, %s21_s14 }
   0x3   :  { %p421_p0 = scmp.ne.s32.totalorder %s21_s14, %s420_s15  ;;  %p426_p2 = scmp.lt.s32.totalorder %s420_s15, %s420_s15 }
   0x5   :  { %p427_p3 = por %p426_p2, %p425_p1 }
   0x7   :  { %p428_p4 = pnand %p427_p3, %p421_p0 }
   0x9   :  { %431 = shalt.err (!%p428_p4)
}
   0xa   :  { %s456_s16 = smov [#allocation2]  }
   0xb   :  { %23 = dma.vmem_to_smem %s21_s14, 16, %s456_s16, [#allocation4]  }
   0xc   :  { %452 = dma.done.wait [#allocation4], 16  }
   0xd   :  { %453 = vsyncadd [#allocation4], 4294967280 }
   0xe   :  { %27 = sfence }
   0xf   :  { %v490_v0 = vld [vmem:[%s529_s1 + $0x8] sm:$0xff]  ;;  %v457_v1 = vmov 1   ;;  %v458_v2 = vmov 0   ;;  %v29_v3 = vld [vmem:[%s529_s1] sm:$0xff]  ;;  %v31_v4 = vld [vmem:[%s529_s1 + $0x10] sm:$0xff]  ;;  %vm75_vm0 = vcmask 97280  }
  0x10   :  { %403 = vset.pattern.permute.xlu1 %v457_v1  ;;  %402 = vset.pattern.permute.xlu0 %v458_v2  ;;  %v459_v5 = vmov 2   ;;  %v353_v6 = vld [vmem:[%s528_s0] ss:$0 sm:$0xff]  ;;  %vm82_vm1 = vcmask 1043456   ;;  %v32_v17 = vld [vmem:[%s529_s1 + $0x18] sm:$0xff]  ;;  %v460_v19 = vmov 3  }
  0x11   :  { %60 = vperm.xlu1 %403, %v490_v0   ;;  %44 = vperm.xlu0 %402, %v490_v0   ;;  %v33_v18 = vld [vmem:[%s529_s1 + $0x20] sm:$0xff]  ;;  %v34_v28 = vld [vmem:[%s529_s1 + $0x28] sm:$0xff]  ;;  %v461_v29 = vmov 0.0   ;;  %vm462_vm2 = vmmov 0   ;;  %v258_v37 = vrot.slane %v490_v0, 4  ;;  %s352_s1 = sld [smem:[#allocation2 + $0x1]] }
  0x12   :  { %377 = vmatprep.mubr.msk.f32.mxu0 %vm75_vm0, %v31_v4  ;;  %384 = vmatprep.mubr.msk.f32.mxu1 %vm75_vm0, %v33_v18  ;;  %s35_s29 = sld [smem:[#allocation2]]  ;;  %s463_s30 = smov [#allocation5]  }
  0x13   :  { %s343_s4 = sshll.u32 %s463_s30, 4  ;;  %s344_s4 = int_to_ptr.vmem [resolvable:$true] %s343_s4 }
  0x14   :  { %s432_s5 = scalar_lea.vmem %s344_s4, 32  ;;  %p437_p6 = scmp.lt.s32.totalorder %s344_s4, %s344_s4 }
  0x15   :  { %56 = vperm.xlu1 %403, %v29_v3   ;;  %39 = vperm.xlu0 %402, %v29_v3   ;;  %p433_p5 = scmp.ne.s32.totalorder %s344_s4, %s432_s5  ;;  %p438_p7 = scmp.lt.s32.totalorder %s432_s5, %s432_s5 }
  0x17   :  { %v335_v39 = vstv %s352_s1  ;;  %p439_p8 = por %p438_p7, %p437_p6 }
  0x18   :  { %336 = vst [vmem:[#allocation5 + $0x1] sm:$0x1] %v335_v39  ;;  %v257_v40 = vstv %s35_s29 }
  0x19   :  { %404 = vset.pattern.permute.xlu0 %v459_v5  ;;  %405 = vset.pattern.permute.xlu1 %v459_v5  ;;  %p440_p9 = pnand %p439_p8, %p433_p5 }
  0x1a   :  { %72 = vperm.xlu0 %404, %v490_v0   ;;  %68 = vperm.xlu1 %405, %v29_v3  }
  0x1e   :  { %406 = vset.pattern.permute.xlu1 %v460_v19  ;;  %407 = vset.pattern.permute.xlu0 %v460_v19 }
  0x1f   :  { %168 = vperm.xlu1 %406, %v490_v0   ;;  %164 = vperm.xlu0 %407, %v29_v3  }
  0x8c   :  { %v61_v7 = vpop.permute.xlu1 %60  ;;  %v45_v8 = vpop.permute.xlu0 %44 }
  0x8d   :  { %v54_v9 = vmul.f32 %v353_v6, %v45_v8 }
  0x8f   :  { %v64_v10 = vadd.f32 %v61_v7, %v54_v9 }
  0x90   :  { %v40_v11 = vpop.permute.xlu0 %39  ;;  %v57_v13 = vpop.permute.xlu1 %56 }
  0x91   :  { %408 = vtanh.f32 %v64_v10  ;;  %v53_v12 = vmul.f32 %v353_v6, %v40_v11 }
  0x93   :  { %v63_v14 = vadd.f32 %v57_v13, %v53_v12 }
  0x95   :  { %410 = vtanh.f32 %v63_v14  ;;  %v73_v20 = vpop.permute.xlu0 %72  ;;  %v69_v22 = vpop.permute.xlu1 %68 }
  0x9a   :  { %v169_v30 = vpop.permute.xlu1 %168  ;;  %v165_v32 = vpop.permute.xlu0 %164 }
  0x9e   :  { %v409_v15 = vpop.eup %408 }
  0x9f   :  { %373 = vmatprep.subr.msk.mxu0 %vm82_vm1, %v409_v15 }
  0xa0   :  { %374 = vmatpush3.msk.msra.mxu0 %vm82_vm1, %v409_v15 }
  0xa2   :  { %v411_v16 = vpop.eup %410 }
  0xa3   :  { %375 = vmatprep.subr.mxu0 %v411_v16 }
  0xa4   :  { %376 = vmatpush3.msra.mxu0 %v411_v16 }
  0xa5   :  { %378 = vmatmul.mubr.msk.f32.vlgmr.msra.gmra.mxu0 %vm75_vm0, %v32_v17  ;;  %387 = vmatprep.subr.mxu0 %v461_v29 }
  0xa6   :  { %391 = vmatprep.mubr.msk.f32.mxu0 %vm462_vm2, %v461_v29 }
 0x165   :  { %v379_v21 = vpop.f32.mrf.mxu0 }
 0x166   :  { %v158_v23 = vadd.f32 %v379_v21, %v73_v20 }
 0x167   :  { %v152_v24 = vpop.f32.mrf.mxu0 }
 0x168   :  { %412 = vtanh.f32 %v158_v23  ;;  %v153_v25 = vadd.f32 %v152_v24, %v69_v22 }
 0x16a   :  { %414 = vtanh.f32 %v153_v25 }
 0x175   :  { %v413_v26 = vpop.eup %412 }
 0x176   :  { %380 = vmatprep.subr.msk.mxu1 %vm82_vm1, %v413_v26 }
 0x177   :  { %v415_v27 = vpop.eup %414  ;;  %381 = vmatpush3.msk.msra.mxu1 %vm82_vm1, %v413_v26 }
 0x178   :  { %382 = vmatprep.subr.mxu1 %v415_v27 }
 0x179   :  { %383 = vmatpush3.msra.mxu1 %v415_v27 }
 0x17a   :  { %385 = vmatmul.mubr.msk.f32.vlgmr.msra.gmra.mxu1 %vm75_vm0, %v34_v28 }
 0x23a   :  { %v386_v31 = vpop.f32.mrf.mxu1 }
 0x23b   :  { %v252_v33 = vadd.f32 %v386_v31, %v169_v30 }
 0x23c   :  { %v246_v34 = vpop.f32.mrf.mxu1 }
 0x23d   :  { %416 = vtanh.f32 %v252_v33  ;;  %v247_v35 = vadd.f32 %v246_v34, %v165_v32 }
 0x23f   :  { %418 = vtanh.f32 %v247_v35 }
 0x24a   :  { %v417_v36 = vpop.eup %416 }
 0x24b   :  { %388 = vmatpush3.msk.msra.mxu0 %vm82_vm1, %v417_v36 }
 0x24c   :  { %v419_v38 = vpop.eup %418  ;;  %389 = vmatprep.subr.mxu0 %v461_v29 }
 0x24d   :  { %390 = vmatpush3.msra.mxu0 %v419_v38 }
 0x24e   :  { %392 = vmatmul.mubr.msk.f32.vlgmr.msra.gmra.mxu0 %vm75_vm0, %v258_v37 }
 0x30e   :  { %v330_v41 = vpop.f32.mrf.mxu0 }
 0x30f   :  { %v331_v42 = vadd.f32 %v330_v41, %v257_v40 }
 0x310   :  { %v393_v43 = vpop.f32.mrf.mxu0 }
 0x311   :  { %334 = vst [vmem:[#allocation5] sm:$0x1] %v331_v42 }
 0x312   :  { %443 = shalt.err (!%p440_p9)
}
 0x313   :  { %346 = dma.vmem_to_hbm [thread:$0]  %s344_s4, 32, %s531_s3, [#allocation3]  }
 0x314   :  { %454 = dma.done.wait [#allocation3], 32  }
 0x315   :  { %455 = vsyncadd [#allocation3], 4294967264 }
 0x316   :  { %350 = vsyncpa [#allocation3], 1 }
 0x317   :  { %351 = vsyncpa [#allocation4], 1 }

</bundles_post_ra>
